<compile_context>
chip_gen: v5e
topology: v5e:2x2
jax: 0.10.0
libtpu: 0.0.40
codegen_flags: <defaults>
</compile_context>

<pallas_src>
import functools

import jax
import jax.numpy as jnp
from jax import lax
from jax.experimental import pallas as pl
from jax.experimental.pallas import tpu as pltpu

NEG_SLOPE = 0.01  # nn.LeakyReLU default


def _round_up(x, m):
    return ((x + m - 1) // m) * m


def tabular_mapper_kernel(x_ref, w_ref, b_ref, o_ref):
    # x_ref: (TB, T)   w_ref: (C, T)  (PyTorch layout, NOT pre-transposed)
    # b_ref: (1, C)    o_ref: (TB, C)
    y = lax.dot_general(
        x_ref[...], w_ref[...],
        dimension_numbers=(((1,), (1,)), ((), ())),   # x @ W.T on the MXU
        preferred_element_type=jnp.float32)
    y = y + b_ref[...]                                # (1, C) broadcasts
    y = jnp.where(y > 0, y, NEG_SLOPE * y)            # LeakyReLU
    o_ref[...] = y.astype(o_ref.dtype)


@functools.partial(jax.jit, static_argnames=("block_batch",))
def tabular_mapper(x, weight, bias, *, block_batch=512):
    """x: [B, tabular_dim], weight: [chunk_dim, tabular_dim] (PyTorch layout),
    bias: [chunk_dim].  Returns [B, chunk_dim] in x.dtype."""
    B, T = x.shape
    C, T_w = weight.shape
    assert T_w == T

    # Batch tile: as large as the target (default 512 rows), rounded to the
    # 8-row sublane granule; small batches become a single block.
    TB = _round_up(min(B, block_batch), 8)
    B_pad = _round_up(B, TB)
    if B_pad != B:
        x = jnp.pad(x, ((0, B_pad - B), (0, 0)))      # zero rows, sliced off below

    b2d = bias.reshape(1, C)                          # 2D for VMEM tiling

    grid = (B_pad // TB,)
    itemsize = jnp.dtype(x.dtype).itemsize
    cost = pl.CostEstimate(
        flops=2 * B_pad * T * C,
        transcendentals=0,
        bytes_accessed=itemsize * (B_pad * T + C * T + C + B_pad * C),
    )

    out = pl.pallas_call(
        tabular_mapper_kernel,
        out_shape=jax.ShapeDtypeStruct((B_pad, C), x.dtype),
        grid_spec=pl.GridSpec(
            grid=grid,
            in_specs=[
                pl.BlockSpec((TB, T), lambda i: (i, 0)),   # batch tile, pipelined
                pl.BlockSpec((C, T), lambda i: (0, 0)),    # weight: VMEM-resident
                pl.BlockSpec((1, C), lambda i: (0, 0)),    # bias:   VMEM-resident
            ],
            out_specs=pl.BlockSpec((TB, C), lambda i: (i, 0)),
        ),
        compiler_params=pltpu.CompilerParams(
            dimension_semantics=("parallel",)),            # shards over v7x's 2 TCs
        cost_estimate=cost,
    )(x, weight, b2d)

    return out[:B] if B_pad != B else out


def _reference(x, weight, bias):
    y = x @ weight.T + bias
    return jnp.where(y > 0, y, NEG_SLOPE * y)


if __name__ == "__main__":
    tabular_dim, chunk_dim = 32, 64

    key = jax.random.PRNGKey(0)
    k_x, k_w, k_b, k_x2 = jax.random.split(key, 4)

    # Deterministic params (nn.Linear shapes: W [out, in], b [out]).
    bound = 1.0 / (tabular_dim ** 0.5)
    weight = jax.random.uniform(k_w, (chunk_dim, tabular_dim),
                                minval=-bound, maxval=bound, dtype=jnp.float32)
    bias = jax.random.uniform(k_b, (chunk_dim,),
                              minval=-bound, maxval=bound, dtype=jnp.float32)

    # 1) Small batch — single block path.
    batch = 8
    x = jax.random.normal(k_x, (batch, tabular_dim), dtype=jnp.float32)
    out = jax.block_until_ready(tabular_mapper(x, weight, bias))
    ref = _reference(x, weight, bias)
    assert out.shape == (batch, chunk_dim)
    assert jnp.allclose(out, ref, atol=1e-5, rtol=1e-5)

    # 2) Ragged batch with a small tile — exercises multi-block pipelining + padding.
    batch2 = 200
    x2 = jax.random.normal(k_x2, (batch2, tabular_dim), dtype=jnp.float32)
    out2 = jax.block_until_ready(tabular_mapper(x2, weight, bias, block_batch=64))
    ref2 = _reference(x2, weight, bias)
    assert out2.shape == (batch2, chunk_dim)
    assert jnp.allclose(out2, ref2, atol=1e-5, rtol=1e-5)

    print("KERNEL_OK")
</pallas_src>

<mosaic_0001>
module attributes {stable_mosaic.version = 11 : i64} {
  func.func @tabular_mapper_kernel(%arg0: i32, %arg1: memref<8x32xf32, #tpu.memory_space<vmem>>, %arg2: memref<64x32xf32, #tpu.memory_space<vmem>>, %arg3: memref<1x64xf32, #tpu.memory_space<vmem>>, %arg4: memref<8x64xf32, #tpu.memory_space<vmem>>) attributes {dimension_semantics = [#tpu.dimension_semantics<parallel>], iteration_bounds = array<i64: 1>, scalar_prefetch = 0 : i64, scratch_operands = 0 : i64, tpu.core_type = #tpu.core_type<tc>, window_params = [{transform_indices = @transform_0, window_bounds = array<i64: 8, 32>}, {pipeline_mode = #tpu.pipeline_mode<synchronous>, transform_indices = @transform_1, window_bounds = array<i64: 64, 32>}, {pipeline_mode = #tpu.pipeline_mode<synchronous>, transform_indices = @transform_2, window_bounds = array<i64: 1, 64>}, {transform_indices = @transform_3, window_bounds = array<i64: 8, 64>}]} {
    %c0 = arith.constant 0 : index
    %c0_0 = arith.constant 0 : index
    %0 = vector.load %arg1[%c0, %c0_0] : memref<8x32xf32, #tpu.memory_space<vmem>>, vector<8x32xf32>
    %c0_1 = arith.constant 0 : index
    %c0_2 = arith.constant 0 : index
    %1 = vector.load %arg2[%c0_1, %c0_2] : memref<64x32xf32, #tpu.memory_space<vmem>>, vector<64x32xf32>
    %cst = arith.constant dense<0.000000e+00> : vector<8x64xf32>
    %2 = tpu.matmul %0, %1, %cst {dimension_numbers = #tpu.dot_dimension_numbers<[1], [1], [0], [0], [0, 0, 1, 0], [], []>} : vector<8x32xf32>, vector<64x32xf32>, vector<8x64xf32> -> vector<8x64xf32>
    %c0_3 = arith.constant 0 : index
    %c0_4 = arith.constant 0 : index
    %3 = vector.load %arg3[%c0_3, %c0_4] : memref<1x64xf32, #tpu.memory_space<vmem>>, vector<1x64xf32>
    %4 = vector.broadcast %3 : vector<1x64xf32> to vector<8x64xf32>
    %5 = arith.addf %2, %4 : vector<8x64xf32>
    %cst_5 = arith.constant 0.000000e+00 : f32
    %6 = vector.broadcast %cst_5 : f32 to vector<8x64xf32>
    %7 = arith.cmpf ogt, %5, %6 : vector<8x64xf32>
    %cst_6 = arith.constant 0.00999999977 : f32
    %8 = vector.broadcast %cst_6 : f32 to vector<8x64xf32>
    %9 = arith.mulf %8, %5 : vector<8x64xf32>
    %10 = arith.select %7, %5, %9 : vector<8x64xi1>, vector<8x64xf32>
    %c0_7 = arith.constant 0 : index
    %c0_8 = arith.constant 0 : index
    %11 = vector.load %arg4[%c0_7, %c0_8] : memref<8x64xf32, #tpu.memory_space<vmem>>, vector<8x64xf32>
    tpu.vector_store %arg4[%c0_7, %c0_8], %10 {strides = array<i32>} : memref<8x64xf32, #tpu.memory_space<vmem>>, vector<8x64xf32>,
    return
  }
  func.func @transform_0(%arg0: i32) -> (i32, i32) {
    %c0_i32 = arith.constant 0 : i32
    %c0_i32_0 = arith.constant 0 : i32
    return %arg0, %c0_i32 : i32, i32
  }
  func.func @transform_1(%arg0: i32) -> (i32, i32) {
    %c0_i32 = arith.constant 0 : i32
    %c0_i32_0 = arith.constant 0 : i32
    %c0_i32_1 = arith.constant 0 : i32
    return %c0_i32, %c0_i32_0 : i32, i32
  }
  func.func @transform_2(%arg0: i32) -> (i32, i32) {
    %c0_i32 = arith.constant 0 : i32
    %c0_i32_0 = arith.constant 0 : i32
    %c0_i32_1 = arith.constant 0 : i32
    return %c0_i32, %c0_i32_0 : i32, i32
  }
  func.func @transform_3(%arg0: i32) -> (i32, i32) {
    %c0_i32 = arith.constant 0 : i32
    %c0_i32_0 = arith.constant 0 : i32
    return %arg0, %c0_i32 : i32, i32
  }
}

</mosaic_0001>

<bundles_post_ra>
// kernel: tabular_mapper.1
= control target key start
LH: loop header
LB: loop body
LE: loop exit
PB: predicated region body
PF: predicated region fallthrough
CT: control target
= control target key end

     0   :  { %vm28_vm0 = vcmask 261120   ;;  %s197_s0 = inlined_call_operand.vmem [shape: f32[8,32], index: 0, kind: input, shape index: {}]   ;;  %s198_s1 = inlined_call_operand.vmem [shape: f32[64,32], index: 1, kind: input, shape index: {}]   ;;  %s199_s2 = inlined_call_operand.vmem [shape: f32[1,64], index: 2, kind: input, shape index: {}]   ;;  %s200_s3 = inlined_call_operand.hbm [shape: f32[8,64], index: 3, kind: output, shape index: {}]  }
   0x1   :  { %v23_v0 = vld [vmem:[%s198_s1 + $0x38] sm:$0xff]  ;;  %v22_v1 = vld [vmem:[%s198_s1 + $0x30] sm:$0xff] }
   0x2   :  { %97 = vmatpush.xpose.msk.msra.mxu0 %vm28_vm0, %v23_v0 }
   0x3   :  { %8 = vsyncpa [#allocation3], 0  ;;  %v21_v2 = vld [vmem:[%s198_s1 + $0x28] sm:$0xff]  ;;  %v20_v3 = vld [vmem:[%s198_s1 + $0x20] sm:$0xff]  ;;  %s134_s5 = smov [#allocation2]   ;;  %vm79_vm2 = vcmask 523264  }
   0x4   :  { %v19_v4 = vld [vmem:[%s198_s1 + $0x18] sm:$0xff]  ;;  %v18_v5 = vld [vmem:[%s198_s1 + $0x10] sm:$0xff]  ;;  %v17_v6 = vld [vmem:[%s198_s1 + $0x8] sm:$0xff]  ;;  %s86_s6 = sshll.u32 %s134_s5, 4  ;;  %s87_s6 = int_to_ptr.vmem [resolvable:$true] %s86_s6 }
   0x5   :  { %v16_v7 = vld [vmem:[%s198_s1] sm:$0xff]  ;;  %s88_s1 = sshll.u32 %s200_s3, 4  ;;  %s89_s1 = int_to_ptr.hbm [resolvable:$true] %s88_s1 }
   0x6   :  { %98 = vmatpush.xpose.msk.msra.mxu0 %vm28_vm0, %v22_v1  ;;  %v15_v8 = vld [vmem:[%s197_s0] sm:$0xff] }
   0x7   :  { %v107_v9 = vld [vmem:[%s199_s2] ss:$0 sm:$0xff] }
   0xa   :  { %99 = vmatpush.xpose.msk.msra.mxu0 %vm28_vm0, %v21_v2 }
   0xe   :  { %100 = vmatpush.xpose.msk.msra.mxu0 %vm28_vm0, %v20_v3 }
  0x12   :  { %101 = vmatpush.xpose.msk.msra.mxu0 %vm28_vm0, %v19_v4 }
  0x16   :  { %102 = vmatpush.xpose.msk.msra.mxu0 %vm28_vm0, %v18_v5 }
  0x1a   :  { %103 = vmatpush.xpose.msk.msra.mxu0 %vm28_vm0, %v17_v6 }
  0x1e   :  { %104 = vmatpush.xpose.msk.msra.mxu0 %vm28_vm0, %v16_v7 }
  0x21   :  { %105 = vmatmul.msk.f32.vlgmr.msra.gmra.mxu0 %vm28_vm0, %v15_v8 }
  0x9e   :  { %v73_v10 = vpop.f32.mrf.mxu0 }
  0x9f   :  { %v74_v11 = vadd.f32 %v107_v9, %v73_v10 }
  0xa1   :  { %vm76_vm1 = vcmp.gt.f32.partialorder %v74_v11, 0.0  ;;  %v77_v12 = vmul.f32 0.01, %v74_v11 }
  0xa3   :  { %v78_v13 = vsel %vm76_vm1, %v74_v11, %v77_v12 }
  0xa4   :  { %80 = vst.msk [vmem:[#allocation2] sm:$0xff] %vm79_vm2, %v78_v13 }
  0xa5   :  { %91 = dma.vmem_to_hbm [thread:$0]  %s87_s6, 128, %s89_s1, [#allocation3]  }
  0xa6   :  { %132 = dma.done.wait [#allocation3], 128  }
  0xa7   :  { %133 = vsyncadd [#allocation3], 4294967168 }
  0xa8   :  { %96 = vsyncpa [#allocation3], 1 }

</bundles_post_ra>
